<compile_context>
chip_gen: v5e
topology: v5e:2x2
jax: 0.10.0
libtpu: 0.0.40
codegen_flags: <defaults>
</compile_context>

<pallas_src>
import jax
import jax.numpy as jnp
from jax.experimental import pallas as pl
from jax.experimental.pallas import tpu as pltpu


def gaussian_encoder_kernel(
    x_ref,      # [TB, F]      input feature tile
    wc_ref,     # [F, H]       core weight            (grid-resident)
    wh_ref,     # [H, 2D]      fused [mean|logvar] W   (grid-resident)
    bc_ref,     # [1, H]       core bias               (grid-resident)
    bh_ref,     # [1, 2D]      fused head bias         (grid-resident)
    eps_ref,    # [TB, S*D]    standard-normal noise, lane-dense layout
    z_ref,      # [TB, S*D]    output latent samples, lane-dense layout
):
    D = wh_ref.shape[1] // 2
    S = z_ref.shape[1] // D

    x = x_ref[...]

    # core: Linear + ReLU   (MXU matmul, f32 accumulate; bias add un-sliced)
    h = jnp.dot(x, wc_ref[...], preferred_element_type=jnp.float32) + bc_ref[...]
    h = jnp.maximum(h, 0.0)

    # fused mean / log-variance heads: one matmul, static slices of the result
    heads = jnp.dot(h, wh_ref[...], preferred_element_type=jnp.float32) + bh_ref[...]
    mu = heads[:, :D]                       # [TB, D]
    log_var = heads[:, D:]                  # [TB, D]

    # reparameterization (exp runs on the otherwise-idle EUP slot)
    std = jnp.exp(0.5 * log_var)            # [TB, D]

    # lane-dense store: z[b, s*D + d] = mu[b, d] + eps[b, s*D + d] * std[b, d]
    z_ref[...] = (jnp.tile(mu, (1, S))
                  + eps_ref[...] * jnp.tile(std, (1, S))).astype(z_ref.dtype)


def pack_params(params):
    """One-time packing of the torch-style params into fused kernel operands."""
    wc, bc, wm, bm, wl, bl = params
    w_heads = jnp.concatenate([wm, wl], axis=1)     # [H, 2D]
    b_heads = jnp.concatenate([bm, bl], axis=1)     # [1, 2D]
    return wc, w_heads, bc, b_heads


def gaussian_encoder_forward(x, packed_params, eps, *, tb=None):
    """x: [B, F]; eps: [B, S, D]; returns z: [B, S, D]."""
    wc, w_heads, bc, b_heads = packed_params
    B, F = x.shape
    S, D = eps.shape[1], eps.shape[2]
    H = wc.shape[1]

    # row-major contiguous -> metadata-only reshape to a lane-dense 2-D slab
    eps2 = eps.reshape(B, S * D)

    # ---- batch tile selection (multiple of 8 sublanes) --------------------
    if tb is None:
        tb = min(512, B)                      # big tiles amortize ~0.35us/step
    tb = max(8, (tb // 8) * 8)
    n_blocks = pl.cdiv(B, tb)
    b_pad = n_blocks * tb
    if b_pad != B:                            # pad batch to a whole tile
        x = jnp.pad(x, ((0, b_pad - B), (0, 0)))
        eps2 = jnp.pad(eps2, ((0, b_pad - B), (0, 0)))

    # ---- specs: tiled activations, grid-resident parameters ---------------
    act_spec = lambda cols: pl.BlockSpec((tb, cols), lambda i: (i, 0))
    res_spec = lambda shape: pl.BlockSpec(shape, lambda i: (0, 0))

    # ---- scheduling hints ---------------------------------------------------
    flops = 2 * b_pad * (F * H + H * 2 * D) + 4 * b_pad * S * D
    bytes_accessed = 4 * (b_pad * F + F * H + H * 2 * D + H + 2 * D
                          + 2 * b_pad * S * D)
    cost = pl.CostEstimate(flops=flops, transcendentals=b_pad * D,
                           bytes_accessed=bytes_accessed)

    # resident params + 2x double-buffered activation tiles, generous margin;
    # budgeted against v7x's 64 MiB physical VMEM.
    vmem_est = 4 * (F * H + H * 2 * D + H + 2 * D + 2 * tb * (F + 2 * S * D))
    vmem_limit = int(min(64 << 20, max(8 << 20, 8 * vmem_est)))

    z2 = pl.pallas_call(
        gaussian_encoder_kernel,
        out_shape=jax.ShapeDtypeStruct((b_pad, S * D), jnp.float32),
        grid_spec=pltpu.PrefetchScalarGridSpec(
            num_scalar_prefetch=0,
            grid=(n_blocks,),
            in_specs=[
                act_spec(F),                 # x          [TB, F]
                res_spec((F, H)),            # wc         resident
                res_spec((H, 2 * D)),        # w_heads    resident
                res_spec((1, H)),            # bc         resident
                res_spec((1, 2 * D)),        # b_heads    resident
                act_spec(S * D),             # eps        [TB, S*D]
            ],
            out_specs=act_spec(S * D),       # z          [TB, S*D]
        ),
        compiler_params=pltpu.CompilerParams(
            dimension_semantics=("parallel",),     # dual-TC sharding on v7x
            vmem_limit_bytes=vmem_limit),
        cost_estimate=cost,
    )(x, wc, w_heads, bc, b_heads, eps2)

    return z2[:B].reshape(B, S, D)


def init_params(key, in_dim, hidden_dim, latent_dim):
    """Deterministic synthetic parameters (shapes follow the torch module)."""
    ks = jax.random.split(key, 6)
    wc = jax.random.normal(ks[0], (in_dim, hidden_dim), jnp.float32) * 0.1
    bc = jax.random.normal(ks[1], (1, hidden_dim), jnp.float32) * 0.01
    wm = jax.random.normal(ks[2], (hidden_dim, latent_dim), jnp.float32) * 0.1
    bm = jax.random.normal(ks[3], (1, latent_dim), jnp.float32) * 0.01
    wl = jax.random.normal(ks[4], (hidden_dim, latent_dim), jnp.float32) * 0.1
    bl = jax.random.normal(ks[5], (1, latent_dim), jnp.float32) * 0.01
    return (wc, bc, wm, bm, wl, bl)


if __name__ == "__main__":
    # batch, in_features, hidden, latent_dim, num_samples
    B, F, H, D, S = 16, 32, 32, 16, 4
    TB = 8   # small tile here only to exercise the batch grid (grid=(2,))

    key = jax.random.PRNGKey(0)
    kx, kp, ke = jax.random.split(key, 3)

    x = jax.random.normal(kx, (B, F), jnp.float32)
    params = init_params(kp, F, H, D)
    eps = jax.random.normal(ke, (B, S, D), jnp.float32)  # matches torch.randn in sample()

    packed = pack_params(params)          # done once, outside the hot path
    z = gaussian_encoder_forward(x, packed, eps, tb=TB)
    jax.block_until_ready(z)

    # pure-JAX reference check of the original (unfused) math
    wc, bc, wm, bm, wl, bl = params
    h_ref = jnp.maximum(x @ wc + bc, 0.0)
    mu_ref = h_ref @ wm + bm
    lv_ref = h_ref @ wl + bl
    z_ref = mu_ref[:, None, :] + eps * jnp.exp(0.5 * lv_ref)[:, None, :]
    assert z.shape == (B, S, D)
    assert jnp.allclose(z, z_ref, atol=1e-5, rtol=1e-5)

    print("KERNEL_OK")
</pallas_src>

<mosaic_0001>
module attributes {stable_mosaic.version = 11 : i64} {
  func.func @gaussian_encoder_kernel(%arg0: i32, %arg1: memref<8x32xf32, #tpu.memory_space<vmem>>, %arg2: memref<32x32xf32, #tpu.memory_space<vmem>>, %arg3: memref<32x32xf32, #tpu.memory_space<vmem>>, %arg4: memref<1x32xf32, #tpu.memory_space<vmem>>, %arg5: memref<1x32xf32, #tpu.memory_space<vmem>>, %arg6: memref<8x64xf32, #tpu.memory_space<vmem>>, %arg7: memref<8x64xf32, #tpu.memory_space<vmem>>) attributes {dimension_semantics = [#tpu.dimension_semantics<parallel>], iteration_bounds = array<i64: 2>, scalar_prefetch = 0 : i64, scratch_operands = 0 : i64, tpu.core_type = #tpu.core_type<tc>, window_params = [{transform_indices = @transform_0, window_bounds = array<i64: 8, 32>}, {pipeline_mode = #tpu.pipeline_mode<synchronous>, transform_indices = @transform_1, window_bounds = array<i64: 32, 32>}, {pipeline_mode = #tpu.pipeline_mode<synchronous>, transform_indices = @transform_2, window_bounds = array<i64: 32, 32>}, {pipeline_mode = #tpu.pipeline_mode<synchronous>, transform_indices = @transform_3, window_bounds = array<i64: 1, 32>}, {pipeline_mode = #tpu.pipeline_mode<synchronous>, transform_indices = @transform_4, window_bounds = array<i64: 1, 32>}, {transform_indices = @transform_5, window_bounds = array<i64: 8, 64>}, {transform_indices = @transform_6, window_bounds = array<i64: 8, 64>}]} {
    %c0 = arith.constant 0 : index
    %c0_0 = arith.constant 0 : index
    %0 = vector.load %arg1[%c0, %c0_0] : memref<8x32xf32, #tpu.memory_space<vmem>>, vector<8x32xf32>
    %c0_1 = arith.constant 0 : index
    %c0_2 = arith.constant 0 : index
    %1 = vector.load %arg2[%c0_1, %c0_2] : memref<32x32xf32, #tpu.memory_space<vmem>>, vector<32x32xf32>
    %cst = arith.constant dense<0.000000e+00> : vector<8x32xf32>
    %2 = tpu.matmul %0, %1, %cst {dimension_numbers = #tpu.dot_dimension_numbers<[1], [0], [0], [1], [0, 0, 1, 1], [], []>} : vector<8x32xf32>, vector<32x32xf32>, vector<8x32xf32> -> vector<8x32xf32>
    %c0_3 = arith.constant 0 : index
    %c0_4 = arith.constant 0 : index
    %3 = vector.load %arg4[%c0_3, %c0_4] : memref<1x32xf32, #tpu.memory_space<vmem>>, vector<1x32xf32>
    %4 = vector.broadcast %3 : vector<1x32xf32> to vector<8x32xf32>
    %5 = arith.addf %2, %4 : vector<8x32xf32>
    %cst_5 = arith.constant 0.000000e+00 : f32
    %6 = vector.broadcast %cst_5 : f32 to vector<8x32xf32>
    %7 = arith.maximumf %5, %6 : vector<8x32xf32>
    %c0_6 = arith.constant 0 : index
    %c0_7 = arith.constant 0 : index
    %8 = vector.load %arg3[%c0_6, %c0_7] : memref<32x32xf32, #tpu.memory_space<vmem>>, vector<32x32xf32>
    %cst_8 = arith.constant dense<0.000000e+00> : vector<8x32xf32>
    %9 = tpu.matmul %7, %8, %cst_8 {dimension_numbers = #tpu.dot_dimension_numbers<[1], [0], [0], [1], [0, 0, 1, 1], [], []>} : vector<8x32xf32>, vector<32x32xf32>, vector<8x32xf32> -> vector<8x32xf32>
    %c0_9 = arith.constant 0 : index
    %c0_10 = arith.constant 0 : index
    %10 = vector.load %arg5[%c0_9, %c0_10] : memref<1x32xf32, #tpu.memory_space<vmem>>, vector<1x32xf32>
    %11 = vector.broadcast %10 : vector<1x32xf32> to vector<8x32xf32>
    %12 = arith.addf %9, %11 : vector<8x32xf32>
    %13 = vector.extract_strided_slice %12 {offsets = [0, 0], sizes = [8, 16], strides = [1, 1]} : vector<8x32xf32> to vector<8x16xf32>
    %14 = vector.extract_strided_slice %12 {offsets = [0, 16], sizes = [8, 16], strides = [1, 1]} : vector<8x32xf32> to vector<8x16xf32>
    %cst_11 = arith.constant 5.000000e-01 : f32
    %15 = vector.broadcast %cst_11 : f32 to vector<8x16xf32>
    %16 = arith.mulf %15, %14 : vector<8x16xf32>
    %17 = math.exp %16 : vector<8x16xf32>
    %18 = tpu.concatenate %13, %13, %13, %13 in 1 : vector<8x16xf32>, vector<8x16xf32>, vector<8x16xf32>, vector<8x16xf32> -> vector<8x64xf32>
    %c0_12 = arith.constant 0 : index
    %c0_13 = arith.constant 0 : index
    %19 = vector.load %arg6[%c0_12, %c0_13] : memref<8x64xf32, #tpu.memory_space<vmem>>, vector<8x64xf32>
    %20 = tpu.concatenate %17, %17, %17, %17 in 1 : vector<8x16xf32>, vector<8x16xf32>, vector<8x16xf32>, vector<8x16xf32> -> vector<8x64xf32>
    %21 = arith.mulf %19, %20 : vector<8x64xf32>
    %22 = arith.addf %18, %21 : vector<8x64xf32>
    %c0_14 = arith.constant 0 : index
    %c0_15 = arith.constant 0 : index
    %23 = vector.load %arg7[%c0_14, %c0_15] : memref<8x64xf32, #tpu.memory_space<vmem>>, vector<8x64xf32>
    tpu.vector_store %arg7[%c0_14, %c0_15], %22 {strides = array<i32>} : memref<8x64xf32, #tpu.memory_space<vmem>>, vector<8x64xf32>,
    return
  }
  func.func @transform_0(%arg0: i32) -> (i32, i32) {
    %c0_i32 = arith.constant 0 : i32
    %c0_i32_0 = arith.constant 0 : i32
    return %arg0, %c0_i32 : i32, i32
  }
  func.func @transform_1(%arg0: i32) -> (i32, i32) {
    %c0_i32 = arith.constant 0 : i32
    %c0_i32_0 = arith.constant 0 : i32
    %c0_i32_1 = arith.constant 0 : i32
    return %c0_i32, %c0_i32_0 : i32, i32
  }
  func.func @transform_2(%arg0: i32) -> (i32, i32) {
    %c0_i32 = arith.constant 0 : i32
    %c0_i32_0 = arith.constant 0 : i32
    %c0_i32_1 = arith.constant 0 : i32
    return %c0_i32, %c0_i32_0 : i32, i32
  }
  func.func @transform_3(%arg0: i32) -> (i32, i32) {
    %c0_i32 = arith.constant 0 : i32
    %c0_i32_0 = arith.constant 0 : i32
    %c0_i32_1 = arith.constant 0 : i32
    return %c0_i32, %c0_i32_0 : i32, i32
  }
  func.func @transform_4(%arg0: i32) -> (i32, i32) {
    %c0_i32 = arith.constant 0 : i32
    %c0_i32_0 = arith.constant 0 : i32
    %c0_i32_1 = arith.constant 0 : i32
    return %c0_i32, %c0_i32_0 : i32, i32
  }
  func.func @transform_5(%arg0: i32) -> (i32, i32) {
    %c0_i32 = arith.constant 0 : i32
    %c0_i32_0 = arith.constant 0 : i32
    return %arg0, %c0_i32 : i32, i32
  }
  func.func @transform_6(%arg0: i32) -> (i32, i32) {
    %c0_i32 = arith.constant 0 : i32
    %c0_i32_0 = arith.constant 0 : i32
    return %arg0, %c0_i32 : i32, i32
  }
}

</mosaic_0001>

<bundles_post_ra>
// kernel: tpu_custom_call.1
= control target key start
LH: loop header
LB: loop body
LE: loop exit
PB: predicated region body
PF: predicated region fallthrough
CT: control target
= control target key end

     0   :  { %s1101_s0 = inlined_call_operand.hbm [shape: f32[16,32], index: 0, kind: input, shape index: {}]   ;;  %s1102_s1 = inlined_call_operand.hbm [shape: f32[32,32], index: 1, kind: input, shape index: {}]   ;;  %s1103_s2 = inlined_call_operand.hbm [shape: f32[32,32], index: 2, kind: input, shape index: {}]   ;;  %s1104_s3 = inlined_call_operand.vmem [shape: f32[1,32], index: 3, kind: input, shape index: {}]   ;;  %s1105_s4 = inlined_call_operand.vmem [shape: f32[1,32], index: 4, kind: input, shape index: {}]   ;;  %s1106_s5 = inlined_call_operand.hbm [shape: f32[16,64], index: 5, kind: input, shape index: {}]   ;;  %s1107_s6 = inlined_call_operand.hbm [shape: f32[16,64], index: 6, kind: output, shape index: {}]  }
   0x1   :  { %1111 = sst [smem:[#allocation18_spill]] %s1102_s1 }
   0x2   :  { %1112 = sst [smem:[#allocation19_spill]] %s1103_s2 }
   0x3   :  { %11 = vsyncpa [#allocation3], 0 }
   0x4   :  { %13 = vsyncpa [#allocation3 + $0x1], 0 }
   0x5   :  { %14 = vsyncpa [#allocation6], 0 }
   0x6   :  { %15 = vsyncpa [#allocation9], 0 }
   0x7   :  { %17 = vsyncpa [#allocation9 + $0x1], 0 }
   0x8   :  { %18 = vsyncpa [#allocation4], 0 }
   0x9   :  { %20 = vsyncpa [#allocation4 + $0x1], 0  ;;  %s912_s21 = smov 0   ;;  %s914_s22 = smov 0  }
   0xa   :  { %s916_s23 = smov 0   ;;  %s918_s24 = smov 0  }
   0xb LB: > { %1113 = sst [smem:[#allocation15_spill]] %s863_s23  ;;  %s936_s28 = sadd.s32 4294967295, %s867_s24   ;;  %s867_s24 = sphi %s918_s24, %s1125_s24   ;;  %s863_s23 = sphi %s916_s23, %s1127_s23   ;;  %s859_s22 = sphi %s914_s22, %s1129_s22   ;;  %s855_s21 = sphi %s912_s21, %s1128_s21  }
   0xc   : > { %s1114_s1 = sld [smem:[#allocation18_spill]]  ;;  %p571_p0 = scmp.ge.s32.totalorder %s867_s24, 1 }
   0xd   : > { %p47_p1 = scmp.eq.s32.totalorder %s936_s28, 0  ;;  %p193_p2 = scmp.lt.s32.totalorder %s867_s24, 3 }
   0xe   : > { %s869_s30 = smov [#allocation5]   ;;  %s1116_s2 = sld [smem:[#allocation19_spill]] }
   0xf   : > { %p941_p3 = pnand %p571_p0, %p193_p2  ;;  %s206_s7 = sshll.u32 %s869_s30, 4  ;;  %s207_s7 = int_to_ptr.vmem [resolvable:$true] %s206_s7 }
  0x10   : > { %s870_s11 = smov [#allocation7]   ;;  %s871_s13 = smov 128  }
  0x11   : > { %p605_p4 = pneg %p941_p3  ;;  %s220_s12 = sshll.u32 %s870_s11, 4  ;;  %s221_s12 = int_to_ptr.vmem [resolvable:$true] %s220_s12 }
  0x12   : > { %s204_s27 = sshll.u32 %s1114_s1, 4  ;;  %s872_s14 = smov 8   ;;  %s205_s27 = int_to_ptr.hbm [resolvable:$true] %s204_s27 }
  0x13   : > { %p606_p6 = pnand %p605_p4, %p47_p1  ;;  %s570_s15 = sadd.s32 4294967294, %s867_s24  }
  0x14   : > { %s218_s10 = sshll.u32 %s1116_s2, 4  ;;  %s955_s16 = sadd.s32 1, %s867_s24   ;;  %s219_s10 = int_to_ptr.hbm [resolvable:$true] %s218_s10 }
  0x15   : > { %608 = dma.hbm_to_vmem [thread:$0]  (!%p606_p6), %s205_s27, 512, %s207_s7, [#allocation6], %s871_s13, %s871_s13, %s872_s14  }
  0x16   : > { %611 = dma.hbm_to_vmem [thread:$0]  (!%p606_p6), %s219_s10, 512, %s221_s12, [#allocation6], %s871_s13, %s871_s13, %s872_s14  }
  0x17   : > { %1117 = sst [smem:[#allocation16_spill]] %s955_s16  ;;  %s30_s17 = ssub.s32 %s867_s24, %s955_s16 }
  0x18   : > { %s33_s18 = sadd.s32 1, %s863_s23  ;;  %p31_p7 = scmp.eq.s32.totalorder %s30_s17, 0 }
  0x19   : > { %p40_p8 = scmp.ne.s32.totalorder %s863_s23, %s859_s22  ;;  %p41_p9 = scmp.eq.s32.totalorder %s867_s24, 0 }
  0x1a   : > { %p46_p10 = scmp.ne.s32.totalorder %s859_s22, %s855_s21  ;;  %p180_p13 = scmp.eq.s32.totalorder %s936_s28, 1 }
  0x1b   : > { %s966_s19 = scalar_select %p31_p7, %s863_s23, %s33_s18  }
  0x1c   : > { %p968_p11 = por %p41_p9, %p40_p8  ;;  %p974_p12 = por %p47_p1, %p46_p10 }
  0x1d   : > { %1118 = sst [smem:[#allocation17_spill]] %s966_s19  ;;  %p186_p0 = scmp.eq.s32.totalorder %s570_s15, 1 }
  0x1e   : > { %p625_p2 = scmp.lt.s32.totalorder %s867_s24, 2  ;;  %s981_s26 = sand.u32 1, %s863_s23  }
  0x1f   : > { %p983_p4 = por %p180_p13, %p40_p8  ;;  %p987_p6 = por %p186_p0, %p46_p10 }
  0x20   : > { %s575_s7 = sshll.u32 %s981_s26, 3  ;;  %s576_s8 = sshll.u32 %s867_s24, 3 }
  0x21   : > { %s248_s11 = scalar_lea.hbm %s1101_s0, %s576_s8  ;;  %s244_s12 = scalar_lea.vmem [#allocation2], %s575_s7 }
  0x22   : > { %s252_s13 = sshll.u32 %s244_s12, 4  ;;  %s250_s14 = sshll.u32 %s248_s11, 4  ;;  %s253_s13 = int_to_ptr.vmem [resolvable:$true] %s252_s13  ;;  %s251_s14 = int_to_ptr.hbm [resolvable:$true] %s250_s14 }
  0x23   : > { %p998_p7 = pnand %p625_p2, %p968_p11  ;;  %s267_s1 = scalar_lea.hbm %s1106_s5, %s576_s8 }
  0x24   : > { %s241_s2 = scalar_lea.sflag [#allocation3], %s981_s26  ;;  %s733_s19 = sshra.s32 %s251_s14, 4  ;;  %s734_s19 = int_to_ptr.hbm [resolvable:$true] %s733_s19 }
  0x25   : > { %s735_s9 = scalar_lea.hbm %s734_s19, 8  ;;  %p737_p9 = pneg %p998_p7 }
  0x26   : > { %p736_p8 = scmp.ne.s32.totalorder %s734_s19, %s735_s9  ;;  %s740_s11 = scalar_lea.hbm %s1101_s0, 16 }
  0x27   : > { %p741_p13 = scmp.lt.s32.totalorder %s734_s19, %s1101_s0  ;;  %p742_p0 = scmp.lt.s32.totalorder %s740_s11, %s735_s9 }
  0x28   : > { %p738_p10 = pnand %p737_p9, %p736_p8 }
  0x29   : > { %p743_p2 = por %p742_p0, %p741_p13 }
  0x2a   : > { %p739_p11 = pneg %p738_p10 }
  0x2c   : > { %p744_p5 = pnand %p743_p2, %p739_p11 }
  0x2e   : > { %747 = shalt.err (!%p744_p5)
}
  0x2f   : > { %615 = dma.hbm_to_vmem [thread:$0]  (!%p998_p7), %s251_s14, 128, %s253_s13, %s241_s2  }
  0x30   : > { %s269_s8 = sshll.u32 %s267_s1, 4  ;;  %s263_s18 = scalar_lea.vmem [#allocation8], %s575_s7  ;;  %s270_s8 = int_to_ptr.hbm [resolvable:$true] %s269_s8 }
  0x31   : > { %s271_s23 = sshll.u32 %s263_s18, 4  ;;  %s260_s20 = scalar_lea.sflag [#allocation9], %s981_s26  ;;  %s272_s23 = int_to_ptr.vmem [resolvable:$true] %s271_s23 }
  0x32   : > { %s763_s10 = sshra.s32 %s270_s8, 4  ;;  %s770_s11 = scalar_lea.hbm %s1106_s5, 16  ;;  %s764_s10 = int_to_ptr.hbm [resolvable:$true] %s763_s10 }
  0x33   : > { %s765_s16 = scalar_lea.hbm %s764_s10, 8  ;;  %p771_p5 = scmp.lt.s32.totalorder %s764_s10, %s1106_s5 }
  0x34   : > { %p766_p8 = scmp.ne.s32.totalorder %s764_s10, %s765_s16  ;;  %p772_p13 = scmp.lt.s32.totalorder %s770_s11, %s765_s16 }
  0x36   : > { %p768_p10 = pnand %p766_p8, %p737_p9  ;;  %p773_p0 = por %p772_p13, %p771_p5 }
  0x38   : > { %p769_p11 = pneg %p768_p10 }
  0x3a   : > { %p774_p2 = pnand %p773_p0, %p769_p11 }
  0x3c   : > { %777 = shalt.err (!%p774_p2)
}
  0x3d   : > { %618 = dma.hbm_to_vmem [thread:$0]  (!%p998_p7), %s270_s8, 128, %s272_s23, %s260_s20  }
  0x3e   : > { %280 = sbr.rel (%p941_p3) target bundleno = 481 (0x1e1), region = 44  ;;  %s1034_s1 = sand.u32 (!%p941_p3), 1, %s859_s22  }
  0x3f   : > { %s1037_s26 = sshll.u32 (!%p941_p3), %s1034_s1, 3  ;;  %s283_s7 = scalar_lea.sflag (!%p941_p3), [#allocation3], %s1034_s1 }
  0x40   : > { %s286_s16 = scalar_lea.vmem (!%p941_p3), [#allocation2], %s1037_s26 }
  0x43   : > { %838 = dma.done.wait (%p974_p12), %s283_s7, 128  }
  0x44   : > { %840 = vsyncadd (%p974_p12), %s283_s7, 4294967168 }
  0x45   : > { %842 = dma.done.wait (%p47_p1), [#allocation6], 1024  }
  0x46   : > { %844 = vsyncadd (%p47_p1), [#allocation6], 4294966272  ;;  %s303_s23 = scalar_lea.sflag [#allocation9], %s1034_s1  ;;  %s306_s29 = scalar_lea.vmem [#allocation8], %s1037_s26 }
  0x47   : > { %846 = dma.done.wait (%p974_p12), %s303_s23, 128  }
  0x48   : > { %848 = vsyncadd (%p974_p12), %s303_s23, 4294967168  ;;  %v345_v0 = vld [vmem:[#allocation5 + $0x18] sm:$0xff]  ;;  %v344_v1 = vld [vmem:[#allocation5 + $0x10] sm:$0xff]  ;;  %vm350_vm0 = vcmask 261120   ;;  %s873_s17 = smov 32   ;;  %s874_s8 = smov 16  }
  0x49   : > { %366 = vmatpush.msra.mxu0 %v345_v0  ;;  %v378_v2 = vld [vmem:[#allocation7 + $0x18] sm:$0xff]  ;;  %v343_v3 = vld [vmem:[#allocation5 + $0x8] sm:$0xff]  ;;  %v342_v4 = vld [vmem:[#allocation5] sm:$0xff]  ;;  %s875_s18 = smov 48   ;;  %s876_s20 = smov 112   ;;  %vm419_vm1 = vcmask 130048  }
  0x4a   : > { %398 = vmatpush.msra.mxu1 %v378_v2  ;;  %v341_v5 = vld [vmem:[%s286_s16] sm:$0xff]  ;;  %v376_v7 = vld [vmem:[#allocation7 + $0x8] sm:$0xff]  ;;  %v375_v8 = vld [vmem:[#allocation7] sm:$0xff]  ;;  %s588_s10 = sshll.u32 %s936_s28, 3  ;;  %vm422_vm2 = vcmask 392192   ;;  %s340_s12 = scalar_lea.vmem [#allocation10], %s1037_s26 }
  0x4b   : > { %367 = vmatpush.msra.mxu0 %v344_v1  ;;  %v377_v6 = vld [vmem:[#allocation7 + $0x10] sm:$0xff]  ;;  %s453_s11 = scalar_lea.hbm %s1107_s6, %s588_s10  ;;  %v424_v24 = vld [vmem:[%s306_s29] sm:$0xff]  ;;  %s455_s28 = sshll.u32 %s340_s12, 4  ;;  %vm440_vm3 = vcmask 523264   ;;  %s456_s28 = int_to_ptr.vmem [resolvable:$true] %s455_s28 }
  0x4c   : > { %399 = vmatpush.msra.mxu1 %v377_v6  ;;  %v669_v9 = vld [vmem:[%s1104_s3] ss:$0 sm:$0xff]  ;;  %s457_s2 = sshll.u32 %s453_s11, 4  ;;  %s443_s7 = scalar_lea.sflag [#allocation4], %s1034_s1  ;;  %s458_s2 = int_to_ptr.hbm [resolvable:$true] %s457_s2 }
  0x4d   : > { %368 = vmatpush.msra.mxu0 %v343_v3  ;;  %v670_v13 = vld [vmem:[%s1105_s4] ss:$0 sm:$0xff]  ;;  %s807_s16 = sshra.s32 %s458_s2, 4  ;;  %s813_s25 = scalar_lea.hbm %s1107_s6, 16  ;;  %s808_s16 = int_to_ptr.hbm [resolvable:$true] %s807_s16 }
  0x4e   : > { %400 = vmatpush.msra.mxu1 %v376_v7  ;;  %s809_s23 = scalar_lea.hbm %s808_s16, 8  ;;  %p814_p7 = scmp.lt.s32.totalorder %s808_s16, %s1107_s6 }
  0x4f   : > { %369 = vmatpush.msra.mxu0 %v342_v4  ;;  %p810_p1 = scmp.ne.s32.totalorder %s808_s16, %s809_s23  ;;  %p815_p9 = scmp.lt.s32.totalorder %s813_s25, %s809_s23 }
  0x50   : > { %585 = vmatmul.msk.f32.vlgmr.msra.gmra.mxu0 %vm350_vm0, %v341_v5  ;;  %401 = vmatpush.msra.mxu1 %v375_v8 }
  0x51   : > { %p811_p3 = pnand %p810_p1, %p983_p4  ;;  %p816_p8 = por %p815_p9, %p814_p7 }
  0x53   : > { %p812_p12 = pneg %p811_p3 }
  0x55   : > { %p817_p10 = pnand %p816_p8, %p812_p12 }
  0xcd   : > { %v371_v10 = vpop.f32.mrf.mxu0 }
  0xce   : > { %v372_v11 = vadd.f32 %v669_v9, %v371_v10 }
  0xd0   : > { %v374_v12 = vmax.f32 %v372_v11, 0.0 }
  0xd2   : > { %586 = vmatmul.msk.f32.vlgmr.msra.gmra.mxu1 %vm350_vm0, %v374_v12 }
 0x14f   : > { %v403_v14 = vpop.f32.mrf.mxu1 }
 0x150   : > { %v404_v15 = vadd.f32 %v670_v13, %v403_v14 }
 0x152   : > { %v406_v16 = vmul.f32 0.5, %v404_v15  ;;  %413 = vrot.lane.b32.xlu2 %v404_v15, %s873_s17  ;;  %410 = vrot.lane.b32.xlu1 %v404_v15, %s874_s8 }
 0x154   : > { %v407_v17 = vmul.f32 1.442695, %v406_v16 }
 0x156   : > { %671 = vpow2.f32 %v407_v17 }
 0x15a   : > { %416 = vrot.lane.b32.xlu2 %v404_v15, %s875_s18 }
 0x15c   : > { %v672_v18 = vpop.eup %671 }
 0x15d   : > { %432 = vrot.lane.b32.xlu1 %v672_v18, %s873_s17  ;;  %426 = vrot.lane.b32.xlu0 %v672_v18, %s876_s20 }
 0x165   : > { %429 = vrot.lane.b32.xlu0 %v672_v18, %s874_s8 }
 0x1ac   : > { %v414_v20 = vpop.permute.xlu2 %413 }
 0x1b4   : > { %v417_v30 = vpop.permute.xlu2 %416 }
 0x1c4   : > { %v411_v21 = vpop.permute.xlu1 %410 }
 0x1c5   : > { %v420_v22 = vsel %vm419_vm1, %v404_v15, %v411_v21 }
 0x1c6   : > { %v421_v26 = vsel %vm350_vm0, %v420_v22, %v414_v20 }
 0x1c7   : > { %v423_v32 = vsel %vm422_vm2, %v421_v26, %v417_v30 }
 0x1cf   : > { %v427_v19 = vpop.permute.xlu0 %426  ;;  %v433_v27 = vpop.permute.xlu1 %432 }
 0x1d0   : > { %v435_v23 = vsel %vm419_vm1, %v427_v19, %v672_v18 }
 0x1d7   : > { %v430_v25 = vpop.permute.xlu0 %429 }
 0x1d8   : > { %v436_v28 = vsel %vm350_vm0, %v435_v23, %v430_v25 }
 0x1d9   : > { %v437_v29 = vsel %vm422_vm2, %v436_v28, %v433_v27 }
 0x1da   : > { %v438_v31 = vmul.f32 %v437_v29, %v424_v24 }
 0x1dc   : > { %v439_v33 = vadd.f32 %v438_v31, %v423_v32 }
 0x1de   : > { %441 = vst.msk [vmem:[%s340_s12] sm:$0xff] %vm440_vm3, %v439_v33 }
 0x1df   : > { %820 = shalt.err (!%p817_p10)
}
 0x1e0   : > { %603 = dma.vmem_to_hbm [thread:$0]  (%p983_p4), %s456_s28, 128, %s458_s2, %s443_s7  }
 0x1e1 PF: > { %s469_s1 = sand.u32 1, %s855_s21   ;;  %p1124_p11 = scmp.ge.s32.totalorder %s867_s24, 2 }
 0x1e2   : > { %s470_s15 = scalar_lea.sflag [#allocation4], %s469_s1 }
 0x1e3   : > { %p620_p5 = pnand %p1124_p11, %p987_p6 }
 0x1e5   : > { %p621_p13 = pneg %p620_p5 }
 0x1e7   : > { %850 = dma.done.wait (%p621_p13), %s470_s15, 128  }
 0x1e8   : > { %852 = vsyncadd (%p621_p13), %s470_s15, 4294967168  ;;  %s1125_s24 = sld [smem:[#allocation16_spill]]  ;;  %s1128_s21 = smov %s859_s22 }
 0x1e9   : > { %s1126_s17 = sld [smem:[#allocation15_spill]] }
 0x1ea   : > { %s1127_s23 = sld [smem:[#allocation17_spill]] }
 0x1ee   : > { %p23_p0 = scmp.ge.s32.totalorder %s1125_s24, 4  }
 0x1ef   : > { %s1129_s22 = smov %s1126_s17 }
 0x1f0   :  { %25 = sbr.rel (!%p23_p0) target bundleno = 11 (0xb), region = 110 }
 0x1f5   :  { %476 = vsyncpa [#allocation3], 1 }
 0x1f6   :  { %478 = vsyncpa [#allocation3 + $0x1], 1 }
 0x1f7   :  { %479 = vsyncpa [#allocation6], 1 }
 0x1f8   :  { %480 = vsyncpa [#allocation9], 1 }
 0x1f9   :  { %482 = vsyncpa [#allocation9 + $0x1], 1 }
 0x1fa   :  { %483 = vsyncpa [#allocation4], 1 }
 0x1fb   :  { %485 = vsyncpa [#allocation4 + $0x1], 1 }

</bundles_post_ra>
